<compile_context>
chip_gen: v6e
topology: v6e:2x2x1
jax: 0.10.0
libtpu: 0.0.40
codegen_flags: <defaults>
</compile_context>

<pallas_src>
import functools

import jax
import jax.numpy as jnp
from jax.experimental import pallas as pl
from jax.experimental.pallas import tpu as pltpu


def _vq_kernel(z_ref, cbaug_ref, cbt_ref, zq_ref, idx_ref, sse_ref, *,
               hw, tw, mask_tail):
    # z_ref:     (1, C, TW)     NCHW tile: channels on sublanes, spatial on lanes
    # cbaug_ref: (C+1, n_e)     [ -2*cb^T ; ||e||^2 ]   (loop-invariant)
    # cbt_ref:   (C, n_e)       cb^T                    (loop-invariant)
    # zq_ref:    (1, C, TW)     quantized output, NCHW layout (lane-dense)
    # idx_ref:   (1, 1, 1, TW)  argmin indices (lane-dense)
    # sse_ref:   (1, 1, 1, 128) lane-folded partial of sum((z_q - z)^2)
    z = z_ref[0]                                        # (C, TW) f32
    n_e = cbaug_ref.shape[1]

    # Fused distance: d[n, s] = ||e_n||^2 - 2 <e_n, z_s>  via ONE MXU matmul.
    ones = jnp.ones((1, tw), jnp.float32)
    z_aug = jnp.concatenate([z, ones], axis=0)          # (C+1, TW)
    d = jax.lax.dot_general(
        cbaug_ref[...], z_aug, (((0,), (0,)), ((), ())),
        preferred_element_type=jnp.float32)             # (n_e, TW)

    # First-occurrence argmin over the codebook (sublane) axis (torch tie-break).
    dmin = jnp.min(d, axis=0, keepdims=True)            # (1, TW)
    row = jax.lax.broadcasted_iota(jnp.int32, d.shape, 0)
    cand = jnp.where(d <= dmin, row, jnp.int32(n_e))
    idx = jnp.min(cand, axis=0, keepdims=True)          # (1, TW)

    # Codebook gather via one-hot matmul (MXU; z_q rows are bit-exact cb rows).
    onehot = (row == idx).astype(jnp.float32)           # (n_e, TW)
    zq = jax.lax.dot_general(
        cbt_ref[...], onehot, (((1,), (0,)), ((), ())),
        preferred_element_type=jnp.float32)             # (C, TW)

    zq_ref[0] = zq.astype(zq_ref.dtype)
    idx_ref[0, 0] = idx

    # SSE partial: reduce over C (sublanes) and fold TW -> 128 lanes in-kernel
    # so the side output HBM traffic shrinks by TW/128x.
    diff = zq - z
    p = jnp.sum(diff * diff, axis=0, keepdims=True)     # (1, TW)
    if mask_tail:  # static flag; only when HW % TW != 0 (boundary tile)
        s_id = pl.program_id(1)
        pos = s_id * tw + jax.lax.broadcasted_iota(jnp.int32, (1, tw), 1)
        p = jnp.where(pos < hw, p, 0.0)
    acc = jnp.zeros((1, 128), jnp.float32)
    for j in range(tw // 128):                          # static, <= 8 chunks
        acc = acc + p[:, j * 128:(j + 1) * 128]
    sse_ref[0, 0] = acc


def _pick_spatial_tile(hw, n_e, batch):
    """Spatial tile width (lanes):
       * multiple of 128 (lane-dense stores),
       * n_e * TW <= 32K f32 elements so the (n_e, TW) intermediates don't
         spill the 64-entry vreg file,
       * shrunk until batch * num_tiles >= 4 grid steps so both TensorCores
         (v7x) get work and DMA/compute can overlap (v5e/v6e pipelining)."""
    cap = (32768 // max(n_e, 1)) // 128 * 128
    cap = max(128, min(1024, cap))
    hw_pad = -(-hw // 128) * 128
    tw = min(cap, hw_pad)
    while tw > 128 and batch * (-(-hw // tw)) < 4:
        tw -= 128
    return tw


@functools.partial(jax.jit, static_argnames=("beta",))
def vector_quantizer_forward(z_nchw, codebook, *, beta=0.25):
    """Forward pass of VectorQuantizer.

    Args:
      z_nchw:   (B, C, H, W) float32 latents (C == e_dim).
      codebook: (n_e, e_dim) float32 embedding weights.
    Returns:
      (loss, z_q_nchw, perplexity=None, min_encodings=None, min_encoding_indices)
    """
    B, C, H, W = z_nchw.shape
    n_e, e_dim = codebook.shape
    assert C == e_dim
    HW = H * W

    TW = _pick_spatial_tile(HW, n_e, B)
    num_s = -(-HW // TW)                     # ceil-div grid; tail tile masked
    grid = (B, num_s)
    mask_tail = (HW % TW) != 0

    # Pure reshape (no transpose, no data movement) — NCHW layout is kept and
    # fused inside the kernel via the (1, C, TW) block.
    z3 = z_nchw.reshape(B, C, HW).astype(jnp.float32)
    cb_t = codebook.astype(jnp.float32).T                     # (e_dim, n_e), once
    e_sq = jnp.sum(cb_t * cb_t, axis=0, keepdims=True)        # (1, n_e)
    cb_aug = jnp.concatenate([-2.0 * cb_t, e_sq], axis=0)     # (e_dim+1, n_e)

    kernel = functools.partial(_vq_kernel, hw=HW, tw=TW, mask_tail=mask_tail)

    zq3, idx4, sse4 = pl.pallas_call(
        kernel,
        out_shape=(
            jax.ShapeDtypeStruct((B, C, HW), jnp.float32),        # z_q (NCHW)
            jax.ShapeDtypeStruct((B, num_s, 1, TW), jnp.int32),   # argmin indices
            jax.ShapeDtypeStruct((B, num_s, 1, 128), jnp.float32) # SSE partials
        ),
        grid=grid,
        in_specs=[
            pl.BlockSpec((1, C, TW), lambda b, s: (b, 0, s)),     # z tile
            pl.BlockSpec((e_dim + 1, n_e), lambda b, s: (0, 0)),  # [-2cb^T; e^2]
            pl.BlockSpec((e_dim, n_e), lambda b, s: (0, 0)),      # cb^T
        ],
        out_specs=(
            pl.BlockSpec((1, C, TW), lambda b, s: (b, 0, s)),
            pl.BlockSpec((1, 1, 1, TW), lambda b, s: (b, s, 0, 0)),
            pl.BlockSpec((1, 1, 1, 128), lambda b, s: (b, s, 0, 0)),
        ),
        compiler_params=pltpu.CompilerParams(
            dimension_semantics=("parallel", "parallel")),
    )(z3, cb_aug, cb_t)

    # Forward value of commitment + codebook loss is the same MSE (detach only
    # changes gradients).
    sse = jnp.sum(sse4, dtype=jnp.float32)
    mse = sse / jnp.float32(B * C * HW)
    loss = mse + beta * mse

    # Straight-through: z_q = z + (z_q - z).detach() == z_q in forward value.
    zq_nchw = zq3.reshape(B, C, H, W)                       # pure reshape (NCHW)
    min_encoding_indices = idx4.reshape(B, num_s * TW)[:, :HW].reshape(-1)
    # (torch returns int64; int32 is numerically identical for n_e < 2^31)

    perplexity = None       # the reference module returns None
    min_encodings = None    # the reference module returns None
    # TODO(synk): training-mode gradients (detach split / straight-through)
    # would need a custom_vjp; this kernel matches the forward pass only.
    return loss, zq_nchw, perplexity, min_encodings, min_encoding_indices


def _reference(z_nchw, codebook, beta):
    """Pure-JAX reference for verification."""
    B, C, H, W = z_nchw.shape
    z = jnp.transpose(z_nchw, (0, 2, 3, 1)).reshape(-1, C)
    d = (jnp.sum(z ** 2, axis=1, keepdims=True)
         + jnp.sum(codebook ** 2, axis=1)
         - 2.0 * z @ codebook.T)
    idx = jnp.argmin(d, axis=1)
    zq = codebook[idx]
    mse = jnp.mean((zq - z) ** 2)
    loss = mse + beta * mse
    zq_nchw = jnp.transpose(zq.reshape(B, H, W, C), (0, 3, 1, 2))
    return loss, zq_nchw, idx


if __name__ == "__main__":
    # Module config (synthetic, deterministic init — no checkpoint).
    num_embeddings = 64
    embedding_dim = 8
    commitment_cost = 0.25

    key = jax.random.PRNGKey(0)
    k_emb, k_z = jax.random.split(key)

    # nn.Embedding weight ~ U(-rng, rng), rng = max(0.001, 1/n_e)
    rng = max(0.001, 1.0 / num_embeddings)
    codebook = jax.random.uniform(
        k_emb, (num_embeddings, embedding_dim),
        minval=-rng, maxval=rng, dtype=jnp.float32)

    # Input latents in NCHW, C == embedding_dim.
    x = jax.random.normal(k_z, (2, embedding_dim, 16, 16), dtype=jnp.float32)

    loss, z_q, perplexity, min_encodings, indices = vector_quantizer_forward(
        x, codebook, beta=commitment_cost)
    jax.block_until_ready((loss, z_q, indices))

    # Correctness check against a pure-JAX reference.
    ref_loss, ref_zq, ref_idx = _reference(x, codebook, commitment_cost)
    assert jnp.allclose(loss, ref_loss, atol=1e-5, rtol=1e-5)
    assert jnp.allclose(z_q, ref_zq, atol=1e-5, rtol=1e-5)
    assert jnp.array_equal(indices.astype(ref_idx.dtype), ref_idx)

    print("KERNEL_OK")
</pallas_src>

<mosaic_0001>
module attributes {stable_mosaic.version = 11 : i64} {
  func.func @_vq_kernel(%arg0: i32, %arg1: i32, %arg2: memref<1x8x128xf32, #tpu.memory_space<vmem>>, %arg3: memref<9x64xf32, #tpu.memory_space<vmem>>, %arg4: memref<8x64xf32, #tpu.memory_space<vmem>>, %arg5: memref<1x8x128xf32, #tpu.memory_space<vmem>>, %arg6: memref<1x1x1x128xi32, #tpu.memory_space<vmem>>, %arg7: memref<1x1x1x128xf32, #tpu.memory_space<vmem>>) attributes {dimension_semantics = [#tpu.dimension_semantics<parallel>, #tpu.dimension_semantics<parallel>], iteration_bounds = array<i64: 2, 2>, scalar_prefetch = 0 : i64, scratch_operands = 0 : i64, tpu.core_type = #tpu.core_type<tc>, window_params = [{transform_indices = @transform_0, window_bounds = array<i64: 1, 8, 128>}, {pipeline_mode = #tpu.pipeline_mode<synchronous>, transform_indices = @transform_1, window_bounds = array<i64: 9, 64>}, {pipeline_mode = #tpu.pipeline_mode<synchronous>, transform_indices = @transform_2, window_bounds = array<i64: 8, 64>}, {transform_indices = @transform_3, window_bounds = array<i64: 1, 8, 128>}, {transform_indices = @transform_4, window_bounds = array<i64: 1, 1, 1, 128>}, {transform_indices = @transform_5, window_bounds = array<i64: 1, 1, 1, 128>}]} {
    %c0 = arith.constant 0 : index
    %c0_0 = arith.constant 0 : index
    %c0_1 = arith.constant 0 : index
    %0 = vector.load %arg2[%c0, %c0_0, %c0_1] : memref<1x8x128xf32, #tpu.memory_space<vmem>>, vector<1x8x128xf32>
    %1 = vector.shape_cast %0 : vector<1x8x128xf32> to vector<8x128xf32>
    %cst = arith.constant 1.000000e+00 : f32
    %2 = vector.broadcast %cst : f32 to vector<1x128xf32>
    %3 = tpu.concatenate %1, %2 in 0 : vector<8x128xf32>, vector<1x128xf32> -> vector<9x128xf32>
    %c0_2 = arith.constant 0 : index
    %c0_3 = arith.constant 0 : index
    %4 = vector.load %arg3[%c0_2, %c0_3] : memref<9x64xf32, #tpu.memory_space<vmem>>, vector<9x64xf32>
    %cst_4 = arith.constant dense<0.000000e+00> : vector<64x128xf32>
    %5 = tpu.matmul %4, %3, %cst_4 {dimension_numbers = #tpu.dot_dimension_numbers<[0], [0], [1], [1], [0, 1, 1, 1], [], []>} : vector<9x64xf32>, vector<9x128xf32>, vector<64x128xf32> -> vector<64x128xf32>
    %cst_5 = arith.constant dense<0x7F800000> : vector<128xf32>
    %6 = vector.multi_reduction <minimumf>, %5, %cst_5 [0] : vector<64x128xf32> to vector<128xf32>
    %7 = vector.shape_cast %6 : vector<128xf32> to vector<1x128xf32>
    %8 = tpu.iota {dimensions = array<i32: 0>} : vector<64x128xi32>
    %9 = vector.broadcast %7 : vector<1x128xf32> to vector<64x128xf32>
    %10 = arith.cmpf ole, %5, %9 : vector<64x128xf32>
    %c64_i32 = arith.constant 64 : i32
    %11 = vector.broadcast %c64_i32 : i32 to vector<64x128xi32>
    %12 = arith.select %10, %8, %11 : vector<64x128xi1>, vector<64x128xi32>
    %cst_6 = arith.constant dense<2147483647> : vector<128xi32>
    %13 = vector.multi_reduction <minsi>, %12, %cst_6 [0] : vector<64x128xi32> to vector<128xi32>
    %14 = vector.shape_cast %13 : vector<128xi32> to vector<1x128xi32>
    %15 = vector.broadcast %14 : vector<1x128xi32> to vector<64x128xi32>
    %16 = arith.cmpi eq, %8, %15 : vector<64x128xi32>
    %17 = arith.extui %16 : vector<64x128xi1> to vector<64x128xi32>
    %18 = arith.sitofp %17 : vector<64x128xi32> to vector<64x128xf32>
    %c0_7 = arith.constant 0 : index
    %c0_8 = arith.constant 0 : index
    %19 = vector.load %arg4[%c0_7, %c0_8] : memref<8x64xf32, #tpu.memory_space<vmem>>, vector<8x64xf32>
    %cst_9 = arith.constant dense<0.000000e+00> : vector<8x128xf32>
    %20 = tpu.matmul %19, %18, %cst_9 {dimension_numbers = #tpu.dot_dimension_numbers<[1], [0], [0], [1], [0, 0, 1, 1], [], []>} : vector<8x64xf32>, vector<64x128xf32>, vector<8x128xf32> -> vector<8x128xf32>
    %c0_10 = arith.constant 0 : index
    %c0_11 = arith.constant 0 : index
    %c0_12 = arith.constant 0 : index
    %21 = vector.load %arg5[%c0_10, %c0_11, %c0_12] : memref<1x8x128xf32, #tpu.memory_space<vmem>>, vector<1x8x128xf32>
    %22 = vector.shape_cast %21 : vector<1x8x128xf32> to vector<8x128xf32>
    %23 = vector.shape_cast %20 : vector<8x128xf32> to vector<1x8x128xf32>
    tpu.vector_store %arg5[%c0_10, %c0_11, %c0_12], %23 {strides = array<i32>} : memref<1x8x128xf32, #tpu.memory_space<vmem>>, vector<1x8x128xf32>,
    %c0_13 = arith.constant 0 : index
    %c0_14 = arith.constant 0 : index
    %c0_15 = arith.constant 0 : index
    %c0_16 = arith.constant 0 : index
    %24 = vector.load %arg6[%c0_13, %c0_14, %c0_15, %c0_16] : memref<1x1x1x128xi32, #tpu.memory_space<vmem>>, vector<1x1x1x128xi32>
    %25 = vector.shape_cast %24 : vector<1x1x1x128xi32> to vector<1x128xi32>
    %26 = vector.shape_cast %14 : vector<1x128xi32> to vector<1x1x1x128xi32>
    tpu.vector_store %arg6[%c0_13, %c0_14, %c0_15, %c0_16], %26 {strides = array<i32>} : memref<1x1x1x128xi32, #tpu.memory_space<vmem>>, vector<1x1x1x128xi32>,
    %27 = arith.subf %20, %1 : vector<8x128xf32>
    %28 = arith.mulf %27, %27 : vector<8x128xf32>
    %cst_17 = arith.constant dense<0.000000e+00> : vector<128xf32>
    %29 = vector.multi_reduction <add>, %28, %cst_17 [0] : vector<8x128xf32> to vector<128xf32>
    %30 = vector.shape_cast %29 : vector<128xf32> to vector<1x128xf32>
    %cst_18 = arith.constant 0.000000e+00 : f32
    %31 = vector.broadcast %cst_18 : f32 to vector<1x128xf32>
    %32 = arith.addf %31, %30 : vector<1x128xf32>
    %c0_19 = arith.constant 0 : index
    %c0_20 = arith.constant 0 : index
    %c0_21 = arith.constant 0 : index
    %c0_22 = arith.constant 0 : index
    %33 = vector.load %arg7[%c0_19, %c0_20, %c0_21, %c0_22] : memref<1x1x1x128xf32, #tpu.memory_space<vmem>>, vector<1x1x1x128xf32>
    %34 = vector.shape_cast %33 : vector<1x1x1x128xf32> to vector<1x128xf32>
    %35 = vector.shape_cast %32 : vector<1x128xf32> to vector<1x1x1x128xf32>
    tpu.vector_store %arg7[%c0_19, %c0_20, %c0_21, %c0_22], %35 {strides = array<i32>} : memref<1x1x1x128xf32, #tpu.memory_space<vmem>>, vector<1x1x1x128xf32>,
    return
  }
  func.func @transform_0(%arg0: i32, %arg1: i32) -> (i32, i32, i32) {
    %c0_i32 = arith.constant 0 : i32
    %c0_i32_0 = arith.constant 0 : i32
    return %arg0, %c0_i32, %arg1 : i32, i32, i32
  }
  func.func @transform_1(%arg0: i32, %arg1: i32) -> (i32, i32) {
    %c0_i32 = arith.constant 0 : i32
    %c0_i32_0 = arith.constant 0 : i32
    %c0_i32_1 = arith.constant 0 : i32
    return %c0_i32, %c0_i32_0 : i32, i32
  }
  func.func @transform_2(%arg0: i32, %arg1: i32) -> (i32, i32) {
    %c0_i32 = arith.constant 0 : i32
    %c0_i32_0 = arith.constant 0 : i32
    %c0_i32_1 = arith.constant 0 : i32
    return %c0_i32, %c0_i32_0 : i32, i32
  }
  func.func @transform_3(%arg0: i32, %arg1: i32) -> (i32, i32, i32) {
    %c0_i32 = arith.constant 0 : i32
    %c0_i32_0 = arith.constant 0 : i32
    return %arg0, %c0_i32, %arg1 : i32, i32, i32
  }
  func.func @transform_4(%arg0: i32, %arg1: i32) -> (i32, i32, i32, i32) {
    %c0_i32 = arith.constant 0 : i32
    %c0_i32_0 = arith.constant 0 : i32
    %c0_i32_1 = arith.constant 0 : i32
    return %arg0, %arg1, %c0_i32, %c0_i32_0 : i32, i32, i32, i32
  }
  func.func @transform_5(%arg0: i32, %arg1: i32) -> (i32, i32, i32, i32) {
    %c0_i32 = arith.constant 0 : i32
    %c0_i32_0 = arith.constant 0 : i32
    %c0_i32_1 = arith.constant 0 : i32
    return %arg0, %arg1, %c0_i32, %c0_i32_0 : i32, i32, i32, i32
  }
}

</mosaic_0001>

<bundles_post_ra>
// kernel: vector_quantizer_forward.1
= control target key start
LH: loop header
LB: loop body
LE: loop exit
PB: predicated region body
PF: predicated region fallthrough
CT: control target
= control target key end

     0   :  { %s1306_s0 = inlined_call_operand.vmem [shape: f32[2,8,256], index: 0, kind: input, shape index: {}]   ;;  %s1307_s1 = inlined_call_operand.vmem [shape: f32[9,64], index: 1, kind: input, shape index: {}]   ;;  %s1308_s2 = inlined_call_operand.vmem [shape: f32[8,64], index: 2, kind: input, shape index: {}]   ;;  %s1309_s3 = inlined_call_operand.vmem [shape: f32[2,8,256], index: 3, kind: output, shape index: {0}]   ;;  %s1310_s4 = inlined_call_operand.hbm [shape: s32[2,2,1,128], index: 4, kind: output, shape index: {1}]   ;;  %s1311_s5 = inlined_call_operand.vmem [shape: f32[2,2,1,128], index: 5, kind: output, shape index: {2}]  }
   0x1   :  { %1313 = sst [smem:[#allocation5_spill]] %s1306_s0 }
   0x2   :  { %1314 = sst [smem:[#allocation6_spill]] %s1307_s1 }
   0x3   :  { %1315 = sst [smem:[#allocation7_spill]] %s1308_s2 }
   0x4   :  { %11 = vsyncpa [#allocation3], 0 }
   0x5   :  { %13 = vsyncpa [#allocation3 + $0x1], 0  ;;  %s1100_s18 = smov 0   ;;  %s1102_s19 = smov 0  }
   0x6   :  { %s1104_s20 = smov 0   ;;  %s1106_s21 = smov 0  }
   0x7   :  { %s1108_s22 = smov 0   ;;  %s1110_s23 = smov 0  }
   0x8   :  { %s1112_s24 = smov 0   ;;  %s1114_s25 = smov 0  }
   0x9 LB: > { %s804_s26 = sadd.s32 4294967295, %s1064_s25   ;;  %s805_s27 = sadd.s32 4294967294, %s1064_s25   ;;  %s1064_s25 = sphi %s1114_s25, %s19_s25   ;;  %s1060_s24 = sphi %s1112_s24, %s1328_s24   ;;  %s1056_s23 = sphi %s1110_s23, %s1327_s23   ;;  %s1052_s22 = sphi %s1108_s22, %s1326_s22   ;;  %s1048_s21 = sphi %s1106_s21, %s1325_s21   ;;  %s1044_s20 = sphi %s1104_s20, %s1324_s20   ;;  %s1040_s19 = sphi %s1102_s19, %s1323_s19   ;;  %s1036_s18 = sphi %s1100_s18, %s1322_s18  }
   0xa   : > { %s28_s28 = sadd.s32 1, %s1056_s23  ;;  %s31_s29 = sadd.s32 1, %s1060_s24 }
   0xb   : > { %p29_p0 = scmp.ge.s32.totalorder %s28_s28, 2  ;;  %p148_p1 = scmp.ne.s32.totalorder %s1044_s20, %s1040_s19 }
   0xc   : > { %p149_p2 = scmp.eq.s32.totalorder %s804_s26, 3  ;;  %p154_p5 = scmp.ne.s32.totalorder %s1040_s19, %s1036_s18 }
   0xd   : > { %s1330_s28 = smov (%p29_p0, %s28_s28), 0  ;;  %s1332_s29 = smov (!%p29_p0, %s31_s29), %s1060_s24 }
   0xe   : > { %s134_s30 = ssub.s32 %s1056_s23, %s1330_s28  ;;  %p1151_p3 = por %p149_p2, %p148_p1 }
   0xf   : > { %p33_p4 = scmp.ge.s32.totalorder %s1332_s29, 2  ;;  %p155_p6 = scmp.eq.s32.totalorder %s805_s27, 3 }
  0x10   : > { %p808_p7 = scmp.ge.s32.totalorder %s1064_s25, 1  ;;  %p218_p9 = scmp.lt.s32.totalorder %s1064_s25, 5 }
  0x11   : > { %s1334_s29 = smov (%p33_p4, %s1332_s29), 0  ;;  %p1160_p8 = por %p155_p6, %p154_p5 }
  0x12   : > { %s133_s8 = ssub.s32 %s1060_s24, %s1334_s29  ;;  %s138_s9 = sadd.s32 1, %s1044_s20 }
  0x13   : > { %s135_s10 = sor.u32 %s134_s30, %s133_s8  ;;  %p219_p10 = pnand %p808_p7, %p218_p9 }
  0x14   : > { %p136_p11 = scmp.eq.s32.totalorder %s135_s10, 0  ;;  %s1318_s1 = sld [smem:[#allocation6_spill]] (!%p219_p10) }
  0x15   : > { %222 = sbr.rel (%p219_p10) target bundleno = 642 (0x282), region = 32  ;;  %p263_p12 = scmp.lt.s32.totalorder (!%p219_p10), %s1052_s22, 1 }
  0x16   : > { %s1169_s11 = scalar_select %p136_p11, %s1044_s20, %s138_s9  }
  0x17   : > { %p265_p13 = scmp.lt.s32.totalorder (!%p219_p10), %s1048_s21, 1  ;;  %s1319_s0 = sld [smem:[#allocation5_spill]] (!%p219_p10) }
  0x18   : > { %s252_s12 = sand.u32 (!%p219_p10), 1, %s1040_s19   ;;  %s1320_s2 = sld [smem:[#allocation7_spill]] (!%p219_p10) }
  0x19   : > { %s1224_s13 = scalar_lea.vmem (!%p219_p10), [#allocation2], %s252_s12  ;;  %s636_s14 = scalar_lea.sflag (!%p219_p10), [#allocation3], %s252_s12 }
  0x1a   : > { %v287_v0 = vld [vmem:[%s1318_s1] sm:$0xff]  ;;  %vm346_vm0 = vcmask 1040384   ;;  %v1066_v1 = vmov 1.0   ;;  %v288_v2 = vld [vmem:[%s1318_s1 + $0x8] sm:$0x1]  ;;  %s264_s16 = scalar_select %p263_p12, %s1052_s22, 1  ;;  %v468_v29 = vlaneseq }
  0x1b   : > { %289 = vxpose.xlu0.b32.start [1/2] (short) (narrow) %v287_v0, 64  ;;  %863 = vmatprep.subr.msk.mxu0 %vm346_vm0, %v1066_v1  ;;  %s266_s17 = scalar_select %p265_p13, %s1048_s21, 1  ;;  %vm321_vm1 = vcmask 72704   ;;  %v1067_v12 = vmov 0.0   ;;  %vm1068_vm2 = vmmov 0  }
  0x1c   : > { %864 = vmatpush3.msk.msra.mxu0 %vm346_vm0, %v1066_v1  ;;  %s809_s26 = sshll.u32 %s264_s16, 1  ;;  %879 = vmatprep.subr.mxu1 %v1067_v12  ;;  %v1205_v32 = vshrl.u32 %v468_v29, 7  ;;  %s840_s16 = sshll.u32 %s1052_s22, 1 }
  0x1d   : > { %s1183_s27 = sadd.s32 %s809_s26, %s266_s17  ;;  %895 = vmatprep.mubr.msk.f32.mxu1 %vm1068_vm2, %v1067_v12  ;;  %s656_s17 = sadd.s32 %s1048_s21, %s840_s16 }
  0x1e   : > { %s1312_s30 = sshll.u32 %s1183_s27, 3  ;;  %v1208_v35 = vadd.s32 16, %v1205_v32  ;;  %v475_v36 = vadd.s32 48, %v1205_v32  ;;  %v1212_v38 = vadd.s32 8, %v1205_v32  ;;  %v472_v39 = vadd.s32 24, %v1205_v32  ;;  %v540_v0 = vld [vmem:[%s1320_s2] sm:$0xff] }
  0x1f   : > { %290 = vxpose.xlu0.b32.end [2/2] (short) (narrow) %v288_v2, 64  ;;  %s270_s10 = scalar_lea.vmem %s1319_s0, %s1312_s30  ;;  %v473_v40 = vadd.s32 32, %v1205_v32  ;;  %v474_v41 = vadd.s32 40, %v1205_v32  ;;  %v476_v42 = vadd.s32 56, %v1205_v32  ;;  %s841_s26 = sshll.u32 %s656_s17, 4 }
  0x20   : > { %v1191_v3 = vld [vmem:[%s270_s10] sm:$0xff]  ;;  %s660_s8 = sshll.u32 %s1224_s13, 4  ;;  %s658_s30 = scalar_lea.hbm %s1310_s4, %s841_s26  ;;  %s661_s8 = int_to_ptr.vmem [resolvable:$true] %s660_s8 }
  0x21   : > { %865 = vmatprep.subr.mxu0 %v1191_v3  ;;  %s972_s15 = scalar_lea.vmem %s661_s8, 16  ;;  %s1069_s0 = smov [#allocation2]  }
  0x22   : > { %866 = vmatpush3.msra.mxu0 %v1191_v3  ;;  %p973_p0 = scmp.ne.s32.totalorder %s661_s8, %s972_s15  ;;  %s976_s1 = sshll.u32 %s1069_s0, 4  ;;  %s977_s1 = int_to_ptr.vmem [resolvable:$false] %s976_s1 }
  0x23   : > { %s978_s2 = scalar_lea.vmem %s977_s1, 32  ;;  %p979_p4 = scmp.lt.s32.totalorder %s661_s8, %s977_s1 }
  0x24   : > { %p974_p1 = pnand %p973_p0, %p1151_p3  ;;  %p980_p5 = scmp.lt.s32.totalorder %s978_s2, %s972_s15 }
  0x26   : > { %p975_p2 = pneg %p974_p1  ;;  %p981_p6 = por %p980_p5, %p979_p4 }
  0x28   : > { %p982_p7 = pnand %p981_p6, %p975_p2 }
  0x97   : > { %v305_v4 = vpop.trf.xlu0 }
  0x98   : > { %867 = vmatprep.mubr.msk.f32.mxu0 %vm321_vm1, %v305_v4 }
  0x9b   : > { %v306_v5 = vpop.trf.xlu0 }
  0x9c   : > { %868 = vmatmul.mubr.msk.f32.vlgmr.msra.gmra.mxu0 %vm321_vm1, %v306_v5 }
  0x9f   : > { %v307_v6 = vpop.trf.xlu0 }
  0xa0   : > { %870 = vmatprep.mubr.msk.f32.mxu0 %vm321_vm1, %v307_v6 }
  0xa3   : > { %v308_v7 = vpop.trf.xlu0 }
  0xa4   : > { %871 = vmatmul.mubr.msk.f32.gmra.mxu0 %vm321_vm1, %v308_v7 }
  0xa7   : > { %v309_v8 = vpop.trf.xlu0 }
  0xa8   : > { %873 = vmatprep.mubr.msk.f32.mxu0 %vm321_vm1, %v309_v8 }
  0xab   : > { %v310_v9 = vpop.trf.xlu0 }
  0xac   : > { %874 = vmatmul.mubr.msk.f32.gmra.mxu0 %vm321_vm1, %v310_v9 }
  0xaf   : > { %v311_v10 = vpop.trf.xlu0 }
  0xb0   : > { %876 = vmatprep.mubr.msk.f32.mxu0 %vm321_vm1, %v311_v10 }
  0xb3   : > { %v312_v11 = vpop.trf.xlu0 }
  0xb4   : > { %877 = vmatmul.mubr.msk.f32.gmra.mxu0 %vm321_vm1, %v312_v11 }
 0x15c   : > { %v869_v13 = vpop.f32.mrf.mxu0 }
 0x15e   : > { %v416_v14 = vpop.f32.mrf.mxu0 }
 0x164   : > { %v872_v15 = vpop.f32.mrf.mxu0 }
 0x166   : > { %v426_v16 = vpop.f32.mrf.mxu0 }
 0x16c   : > { %v875_v17 = vpop.f32.mrf.mxu0 }
 0x16d   : > { %v456_v22 = vmin.f32 %v869_v13, %v875_v17 }
 0x16e   : > { %v436_v18 = vpop.f32.mrf.mxu0 }
 0x16f   : > { %v455_v20 = vmin.f32 %v416_v14, %v436_v18 }
 0x171   : > { %v459_v25 = vmin.f32 %v455_v20, %v456_v22 }
 0x174   : > { %v878_v19 = vpop.f32.mrf.mxu0 }
 0x175   : > { %v458_v23 = vmin.f32 %v872_v15, %v878_v19 }
 0x176   : > { %v446_v21 = vpop.f32.mrf.mxu0 }
 0x177   : > { %v457_v24 = vmin.f32 %v426_v16, %v446_v21 }
 0x179   : > { %v460_v26 = vmin.f32 %v457_v24, %v458_v23 }
 0x17b   : > { %v461_v27 = vmin.f32 %v459_v25, %v460_v26 }
 0x17d   : > { %v462_v28 = vrot.slane %v461_v27, 4 }
 0x17f   : > { %v463_v30 = vmin.f32 %v461_v27, %v462_v28 }
 0x181   : > { %v464_v31 = vrot.slane %v463_v30, 2 }
 0x183   : > { %v465_v33 = vmin.f32 %v463_v30, %v464_v31 }
 0x185   : > { %v466_v34 = vrot.slane %v465_v33, 1 }
 0x187   : > { %v467_v37 = vmin.f32 %v465_v33, %v466_v34 }
 0x189   : > { %vm479_vm3 = vcmp.le.f32.partialorder %v426_v16, %v467_v37  ;;  %vm483_vm4 = vcmp.le.f32.partialorder %v446_v21, %v467_v37  ;;  %vm477_vm5 = vcmp.le.f32.partialorder %v416_v14, %v467_v37  ;;  %vm478_vm6 = vcmp.le.f32.partialorder %v869_v13, %v467_v37 }
 0x18a   : > { %v487_v43 = vsel %vm479_vm3, %v1208_v35, 64  ;;  %v491_v44 = vsel %vm483_vm4, %v475_v36, 64  ;;  %vm480_vm7 = vcmp.le.f32.partialorder %v872_v15, %v467_v37  ;;  %vm481_vm8 = vcmp.le.f32.partialorder %v436_v18, %v467_v37 }
 0x18b   : > { %vm497_vm9 = vcmp.lt.s32.totalorder %v487_v43, %v491_v44  ;;  %vm482_vm10 = vcmp.le.f32.partialorder %v875_v17, %v467_v37  ;;  %vm484_vm11 = vcmp.le.f32.partialorder %v878_v19, %v467_v37  ;;  %v485_v45 = vsel %vm477_vm5, %v1205_v32, 64 }
 0x18c   : > { %v486_v46 = vsel %vm478_vm6, %v1212_v38, 64  ;;  %v488_v47 = vsel %vm480_vm7, %v472_v39, 64  ;;  %v489_v48 = vsel %vm481_vm8, %v473_v40, 64  ;;  %v498_v49 = vsel %vm497_vm9, %v487_v43, %v491_v44 }
 0x18d   : > { %v490_v50 = vsel %vm482_vm10, %v474_v41, 64  ;;  %v492_v51 = vsel %vm484_vm11, %v476_v42, 64  ;;  %vm493_vm12 = vcmp.lt.s32.totalorder %v485_v45, %v489_v48 }
 0x18e   : > { %v494_v52 = vsel %vm493_vm12, %v485_v45, %v489_v48  ;;  %vm495_vm13 = vcmp.lt.s32.totalorder %v486_v46, %v490_v50  ;;  %vm499_vm14 = vcmp.lt.s32.totalorder %v488_v47, %v492_v51  ;;  %vm541_vm12 = vcmask 523264  }
 0x18f   : > { %v496_v53 = vsel %vm495_vm13, %v486_v46, %v490_v50  ;;  %v500_v54 = vsel %vm499_vm14, %v488_v47, %v492_v51 }
 0x190   : > { %vm501_vm15 = vcmp.lt.s32.totalorder %v494_v52, %v496_v53  ;;  %vm503_vm0 = vcmp.lt.s32.totalorder %v498_v49, %v500_v54 }
 0x191   : > { %v502_v55 = vsel %vm501_vm15, %v494_v52, %v496_v53  ;;  %v504_v56 = vsel %vm503_vm0, %v498_v49, %v500_v54 }
 0x192   : > { %vm505_vm1 = vcmp.lt.s32.totalorder %v502_v55, %v504_v56 }
 0x193   : > { %v506_v57 = vsel %vm505_vm1, %v502_v55, %v504_v56 }
 0x194   : > { %v507_v58 = vrot.slane %v506_v57, 4 }
 0x196   : > { %vm508_vm2 = vcmp.lt.s32.totalorder %v506_v57, %v507_v58 }
 0x197   : > { %v509_v59 = vsel %vm508_vm2, %v506_v57, %v507_v58 }
 0x198   : > { %v510_v60 = vrot.slane %v509_v59, 2 }
 0x19a   : > { %vm511_vm3 = vcmp.lt.s32.totalorder %v509_v59, %v510_v60 }
 0x19b   : > { %v512_v61 = vsel %vm511_vm3, %v509_v59, %v510_v60 }
 0x19c   : > { %v513_v62 = vrot.slane %v512_v61, 1 }
 0x19e   : > { %vm514_vm4 = vcmp.lt.s32.totalorder %v512_v61, %v513_v62 }
 0x19f   : > { %v515_v63 = vsel %vm514_vm4, %v512_v61, %v513_v62 }
 0x1a0   : > { %vm523_vm5 = vcmp.eq.s32.totalorder %v476_v42, %v515_v63  ;;  %616 = vst [vmem:[%s1224_s13] sm:$0x1] %v515_v63  ;;  %vm522_vm6 = vcmp.eq.s32.totalorder %v475_v36, %v515_v63  ;;  %vm521_vm7 = vcmp.eq.s32.totalorder %v474_v41, %v515_v63  ;;  %vm520_vm8 = vcmp.eq.s32.totalorder %v473_v40, %v515_v63 }
 0x1a1   : > { %880 = vmatpush3.msk.msra.mxu1 %vm523_vm5, %v1066_v1  ;;  %vm519_vm9 = vcmp.eq.s32.totalorder %v472_v39, %v515_v63  ;;  %vm518_vm10 = vcmp.eq.s32.totalorder %v1208_v35, %v515_v63  ;;  %vm517_vm11 = vcmp.eq.s32.totalorder %v1212_v38, %v515_v63  ;;  %vm516_vm13 = vcmp.eq.s32.totalorder %v1205_v32, %v515_v63 }
 0x1a2   : > { %881 = vmatprep.subr.mxu1 %v1067_v12 }
 0x1a3   : > { %882 = vmatpush3.msk.msra.mxu1 %vm522_vm6, %v1066_v1 }
 0x1a4   : > { %883 = vmatprep.subr.mxu1 %v1067_v12 }
 0x1a5   : > { %884 = vmatpush3.msk.msra.mxu1 %vm521_vm7, %v1066_v1 }
 0x1a6   : > { %885 = vmatprep.subr.mxu1 %v1067_v12 }
 0x1a7   : > { %886 = vmatpush3.msk.msra.mxu1 %vm520_vm8, %v1066_v1 }
 0x1a8   : > { %887 = vmatprep.subr.mxu1 %v1067_v12 }
 0x1a9   : > { %888 = vmatpush3.msk.msra.mxu1 %vm519_vm9, %v1066_v1 }
 0x1aa   : > { %889 = vmatprep.subr.mxu1 %v1067_v12 }
 0x1ab   : > { %890 = vmatpush3.msk.msra.mxu1 %vm518_vm10, %v1066_v1 }
 0x1ac   : > { %891 = vmatprep.subr.mxu1 %v1067_v12 }
 0x1ad   : > { %892 = vmatpush3.msk.msra.mxu1 %vm517_vm11, %v1066_v1 }
 0x1ae   : > { %893 = vmatprep.subr.mxu1 %v1067_v12 }
 0x1af   : > { %894 = vmatpush3.msk.msra.mxu1 %vm516_vm13, %v1066_v1 }
 0x1b0   : > { %896 = vmatmul.mubr.msk.f32.vlgmr.msra.gmra.mxu1 %vm541_vm12, %v540_v0 }
 0x1b1   : > { %985 = shalt.err (!%p982_p7)
}
 0x1b2   : > { %s986_s21 = scalar_lea.hbm %s658_s30, 16  ;;  %s990_s13 = scalar_lea.hbm %s1310_s4, 64 }
 0x1b3   : > { %p987_p9 = scmp.ne.s32.totalorder %s658_s30, %s986_s21  ;;  %p991_p12 = scmp.lt.s32.totalorder %s658_s30, %s1310_s4 }
 0x1b4   : > { %p992_p13 = scmp.lt.s32.totalorder %s990_s13, %s986_s21 }
 0x1b5   : > { %p988_p10 = pnand %p987_p9, %p1151_p3 }
 0x1b6   : > { %p993_p0 = por %p992_p13, %p991_p12 }
 0x1b7   : > { %p989_p11 = pneg %p988_p10 }
 0x1b9   : > { %p994_p1 = pnand %p993_p0, %p989_p11 }
 0x1bb   : > { %997 = shalt.err (!%p994_p1)
}
 0x1bc   : > { %898 = dma.vmem_to_hbm [thread:$0]  (%p1151_p3), %s661_s8, 16, %s658_s30, %s636_s14  }
 0x1bd   : > { %s1321_s0 = sshll.u32 %s1183_s27, 3  ;;  %s285_s30 = scalar_lea.vmem %s1311_s5, %s1183_s27 }
 0x1be   : > { %s278_s26 = scalar_lea.vmem %s1309_s3, %s1321_s0 }
 0x270   : > { %v611_v1 = vpop.f32.mrf.mxu1 }
 0x271   : > { %615 = vst [vmem:[%s278_s26] sm:$0xff] %v611_v1  ;;  %v617_v2 = vsub.f32 %v611_v1, %v1191_v3 }
 0x272   : > { %v897_v4 = vpop.f32.mrf.mxu1 }
 0x273   : > { %v618_v5 = vmul.f32 %v617_v2, %v617_v2 }
 0x275   : > { %v619_v6 = vrot.slane %v618_v5, 4 }
 0x277   : > { %v620_v7 = vadd.f32 %v619_v6, %v618_v5 }
 0x279   : > { %v621_v8 = vrot.slane %v620_v7, 2 }
 0x27b   : > { %v622_v9 = vadd.f32 %v621_v8, %v620_v7 }
 0x27d   : > { %v623_v10 = vrot.slane %v622_v9, 1 }
 0x27f   : > { %v624_v11 = vadd.f32 %v623_v10, %v622_v9 }
 0x281   : > { %626 = vst [vmem:[%s285_s30] sm:$0x1] %v624_v11 }
 0x282 PF: > { %p904_p3 = scmp.ge.s32.totalorder %s1064_s25, 2  ;;  %s686_s8 = sand.u32 1, %s1036_s18  }
 0x283   : > { %s687_s10 = scalar_lea.sflag [#allocation3], %s686_s8 }
 0x284   : > { %p901_p2 = pnand %p904_p3, %p1160_p8 }
 0x286   : > { %p902_p4 = pneg %p901_p2 }
 0x288   : > { %1031 = dma.done.wait (%p902_p4), %s687_s10, 16  }
 0x289   : > { %1033 = vsyncadd (%p902_p4), %s687_s10, 4294967280  ;;  %s19_s25 = sadd.s32 1, %s1064_s25   ;;  %s1322_s18 = smov %s1040_s19 }
 0x28a   : > { %p16_p5 = scmp.ge.s32.totalorder %s19_s25, 6   ;;  %s1323_s19 = smov %s1044_s20 }
 0x28b   : > { %s1324_s20 = smov %s1169_s11  ;;  %s1325_s21 = smov %s1056_s23 }
 0x28c   : > { %s1326_s22 = smov %s1060_s24  ;;  %s1327_s23 = smov %s1330_s28 }
 0x28d   : > { %s1328_s24 = smov %s1334_s29  ;;  %18 = sbr.rel (!%p16_p5) target bundleno = 9 (0x9), region = 91 }
 0x292   :  { %701 = vsyncpa [#allocation3], 1 }
 0x293   :  { %703 = vsyncpa [#allocation3 + $0x1], 1 }

</bundles_post_ra>
